<compile_context>
chip_gen: v7x
topology: tpu7x:2x2x1
jax: 0.10.0
libtpu: 0.0.40
codegen_flags: <defaults>
</compile_context>

<pallas_src>
import functools
import math

import jax
import jax.numpy as jnp
from jax.experimental import pallas as pl
from jax.experimental.pallas import tpu as pltpu


# ----------------------------------------------------------------------------
# Pallas kernels
# ----------------------------------------------------------------------------
def _qkv_rope_kernel(x_ref, w_ref, b_ref, cos_ref, sin_ref,
                     q_ref, k_ref, v_ref, *, n_head, head_size, rot):
    # x_ref: (1, tm, C); w_ref: (C, 3A); b_ref: (1, 3A)
    # cos_ref / sin_ref: (tm, rot//2)  (rotary tables; the (T, rot) emb repeats)
    # outputs q/k/v: (1, tm, A) with A = n_head * head_size
    rot2 = rot // 2
    A = n_head * head_size
    y = jnp.dot(x_ref[0], w_ref[...],
                preferred_element_type=jnp.float32) + b_ref[...]
    q = y[:, :A]
    k = y[:, A:2 * A]
    v_ref[0] = y[:, 2 * A:].astype(v_ref.dtype)

    c = cos_ref[...]
    s = sin_ref[...]
    for h in range(n_head):
        base = h * head_size
        for src, dst in ((q, q_ref), (k, k_ref)):
            x1 = src[:, base:base + rot2]
            x2 = src[:, base + rot2:base + rot]
            dst[0, :, base:base + rot2] = (x1 * c - x2 * s).astype(dst.dtype)
            dst[0, :, base + rot2:base + rot] = (x2 * c + x1 * s).astype(dst.dtype)
            dst[0, :, base + rot:base + head_size] = (
                src[:, base + rot:base + head_size].astype(dst.dtype))


def _attn_core_kernel(q_ref, k_ref, v_ref, w_ref, mix_ref, o_ref, *,
                      n_head, head_size):
    # q_ref: (1, tq, A); k_ref/v_ref: (1, T, A); w_ref: (H, tq, T)
    # mix_ref: (H, H) in SMEM; o_ref: (1, tq, A)
    H, hs = n_head, head_size
    tq = q_ref.shape[1]
    T = k_ref.shape[1]
    qi = pl.program_id(1)

    q = q_ref[0]            # scale 1/sqrt(hs) already folded into the weights
    k = k_ref[0]
    v = v_ref[0]

    # causal mask from a single 2D iota pair, shared by all heads
    row = jax.lax.broadcasted_iota(jnp.int32, (tq, T), 0) + qi * tq
    col = jax.lax.broadcasted_iota(jnp.int32, (tq, T), 1)
    causal = col <= row
    neg = jnp.float32(-1e30)

    dn = (((1,), (1,)), ((), ()))      # (tq,hs) x (T,hs) -> (tq,T) on the MXU
    att = []
    for h in range(H):
        qh = q[:, h * hs:(h + 1) * hs]
        kh = k[:, h * hs:(h + 1) * hs]
        sc = jax.lax.dot_general(qh, kh, dn, preferred_element_type=jnp.float32)
        sc = jnp.where(causal, sc, neg)
        m = jnp.max(sc, axis=-1, keepdims=True)
        p = jnp.exp(sc - m)
        l = jnp.sum(p, axis=-1, keepdims=True)
        # softmax * RWKV time weight (w already sliced to this q tile)
        att.append(p * pl.reciprocal(l, approx=True) * w_ref[h])

    # 1x1 conv across heads (head_mix from SMEM scalars) + att @ v,
    # writing each head directly into its column slab of the merged output.
    for ho in range(H):
        mixed = mix_ref[ho, 0] * att[0]
        for hi in range(1, H):
            mixed = mixed + mix_ref[ho, hi] * att[hi]
        out_h = jnp.dot(mixed, v[:, ho * hs:(ho + 1) * hs],
                        preferred_element_type=jnp.float32)
        o_ref[0, :, ho * hs:(ho + 1) * hs] = out_h.astype(o_ref.dtype)


def _out_proj_kernel(x_ref, w_ref, b_ref, g_ref, o_ref):
    # x_ref: (1, tm, A); w_ref: (A, C); b_ref: (1, C); g_ref: (tm, 1)
    y = jnp.dot(x_ref[0], w_ref[...],
                preferred_element_type=jnp.float32) + b_ref[...]
    o_ref[0] = (y * g_ref[...]).astype(o_ref.dtype)


# ----------------------------------------------------------------------------
# Pallas call wrappers
# ----------------------------------------------------------------------------
def _row_tile(T):
    tm = min(T, 128)
    assert T % tm == 0, "sequence length must be a multiple of the row tile"
    return tm, T // tm


def _compiler_params():
    return pltpu.CompilerParams(
        dimension_semantics=("parallel", "parallel"),
        vmem_limit_bytes=32 * 1024 * 1024)


def _qkv_rope_proj(x, wqkv, bqkv, cos_t, sin_t, *, n_head, head_size, rot):
    B, T, C = x.shape
    A3 = wqkv.shape[1]
    A = A3 // 3
    rot2 = rot // 2
    tm, nm = _row_tile(T)
    kern = functools.partial(_qkv_rope_kernel, n_head=n_head,
                             head_size=head_size, rot=rot)
    o_spec = pl.BlockSpec((1, tm, A), lambda b, i: (b, i, 0))
    out_shape = tuple(jax.ShapeDtypeStruct((B, T, A), jnp.float32)
                      for _ in range(3))
    return pl.pallas_call(
        kern,
        out_shape=out_shape,
        grid_spec=pltpu.PrefetchScalarGridSpec(
            num_scalar_prefetch=0,
            grid=(B, nm),
            in_specs=[pl.BlockSpec((1, tm, C), lambda b, i: (b, i, 0)),
                      pl.BlockSpec((C, A3), lambda b, i: (0, 0)),
                      pl.BlockSpec((1, A3), lambda b, i: (0, 0)),
                      pl.BlockSpec((tm, rot2), lambda b, i: (i, 0)),
                      pl.BlockSpec((tm, rot2), lambda b, i: (i, 0))],
            out_specs=(o_spec, o_spec, o_spec)),
        compiler_params=_compiler_params(),
    )(x, wqkv, bqkv, cos_t, sin_t)


def _attn_core(q, k, v, w, mix, *, n_head, head_size):
    B, T, A = q.shape
    H = n_head
    tq, nq = _row_tile(T)
    kern = functools.partial(_attn_core_kernel, n_head=H, head_size=head_size)
    return pl.pallas_call(
        kern,
        out_shape=jax.ShapeDtypeStruct((B, T, A), jnp.float32),
        grid_spec=pltpu.PrefetchScalarGridSpec(
            num_scalar_prefetch=0,
            grid=(B, nq),
            in_specs=[pl.BlockSpec((1, tq, A), lambda b, i: (b, i, 0)),
                      pl.BlockSpec((1, T, A), lambda b, i: (b, 0, 0)),
                      pl.BlockSpec((1, T, A), lambda b, i: (b, 0, 0)),
                      pl.BlockSpec((H, tq, T), lambda b, i: (0, i, 0)),
                      pl.BlockSpec(memory_space=pltpu.MemorySpace.SMEM)],
            out_specs=pl.BlockSpec((1, tq, A), lambda b, i: (b, i, 0))),
        compiler_params=_compiler_params(),
    )(q, k, v, w, mix)


def _out_proj(x, wo, bo, gamma):
    B, T, A = x.shape
    C = wo.shape[1]
    tm, nm = _row_tile(T)
    return pl.pallas_call(
        _out_proj_kernel,
        out_shape=jax.ShapeDtypeStruct((B, T, C), jnp.float32),
        grid_spec=pltpu.PrefetchScalarGridSpec(
            num_scalar_prefetch=0,
            grid=(B, nm),
            in_specs=[pl.BlockSpec((1, tm, A), lambda b, i: (b, i, 0)),
                      pl.BlockSpec((A, C), lambda b, i: (0, 0)),
                      pl.BlockSpec((1, C), lambda b, i: (0, 0)),
                      pl.BlockSpec((tm, 1), lambda b, i: (i, 0))],
            out_specs=pl.BlockSpec((1, tm, C), lambda b, i: (b, i, 0))),
        compiler_params=_compiler_params(),
    )(x, wo, bo.reshape(1, C), gamma)


# ----------------------------------------------------------------------------
# JAX-side parameter precompute / layout glue (mirrors the PyTorch module)
# ----------------------------------------------------------------------------
def _time_shift(x):
    B, T, C = x.shape
    half = C // 2
    shifted = jnp.pad(x[:, :, :half], ((0, 0), (1, 0), (0, 0)))[:, :T, :]
    return jnp.concatenate([shifted, x[:, :, half:]], axis=-1)


def _time_weight(time_w, time_alpha, time_beta, T, TT):
    # Literal translation of the pad/tile/reshape construction in MHA_pro.
    w = jnp.pad(time_w, ((0, 0), (0, TT)))          # (H, 2*TT)
    w = jnp.tile(w, (1, TT))                         # (H, 2*TT*TT)
    w = w[:, :-TT].reshape(-1, TT, 2 * TT - 1)
    w = w[:, :, TT - 1:]                             # (H, TT, TT)
    return w[:, :T, :T] * time_alpha[:, :, :T] * time_beta[:, :T, :]


def _rotary_half_tables(T, rot, base=10000.0):
    # (T, rot//2) cos/sin tables; emb = cat(freqs, freqs) repeats, so the first
    # half is all the kernel needs.
    inv_freq = 1.0 / (base ** (jnp.arange(0, rot, 2, dtype=jnp.float32) / rot))
    t = jnp.arange(T, dtype=jnp.float32)
    freqs = jnp.einsum("i,j->ij", t, inv_freq)
    return jnp.cos(freqs), jnp.sin(freqs)


# ----------------------------------------------------------------------------
# Full forward (Pallas path)
# ----------------------------------------------------------------------------
def mha_pro_forward(x, p, *, n_head, ctx_len):
    B, T, C = x.shape
    A = p["wq"].shape[1]
    H = n_head
    hs = A // H
    rot = int(hs * 0.5)
    assert rot % 2 == 0 and A % H == 0

    scale = 1.0 / math.sqrt(hs)

    # layout glue + parameter precompute (O(params), done once)
    xs = _time_shift(x)
    wqkv = jnp.concatenate([p["wq"] * scale, p["wk"], p["wv"]], axis=1)
    bqkv = jnp.concatenate([p["bq"] * scale, p["bk"], p["bv"]]).reshape(1, 3 * A)
    cos_t, sin_t = _rotary_half_tables(T, rot)
    w = _time_weight(p["time_w"], p["time_alpha"], p["time_beta"], T, ctx_len)

    q, k, v = _qkv_rope_proj(xs, wqkv, bqkv, cos_t, sin_t,
                             n_head=H, head_size=hs, rot=rot)
    attn_out = _attn_core(q, k, v, w, p["head_mix"], n_head=H, head_size=hs)
    return _out_proj(attn_out, p["wo"], p["bo"], p["time_gamma"][:T, :])


# ----------------------------------------------------------------------------
# Pure-JAX reference (independent of the kernels) for correctness checking
# ----------------------------------------------------------------------------
def _rotate_half(x):
    half = x.shape[-1] // 2
    return jnp.concatenate([-x[..., half:], x[..., :half]], axis=-1)


def mha_pro_reference(x, p, *, n_head, ctx_len):
    B, T, C = x.shape
    A = p["wq"].shape[1]
    H = n_head
    hs = A // H
    rot = int(hs * 0.5)

    w = _time_weight(p["time_w"], p["time_alpha"], p["time_beta"], T, ctx_len)
    xs = _time_shift(x)

    def proj(wm, bm):
        return (xs @ wm + bm).reshape(B, T, H, hs).transpose(0, 2, 1, 3)

    q, k, v = proj(p["wq"], p["bq"]), proj(p["wk"], p["bk"]), proj(p["wv"], p["bv"])

    inv_freq = 1.0 / (10000.0 ** (jnp.arange(0, rot, 2, dtype=jnp.float32) / rot))
    t = jnp.arange(T, dtype=jnp.float32)
    freqs = jnp.einsum("i,j->ij", t, inv_freq)
    emb = jnp.concatenate([freqs, freqs], axis=-1)
    cos, sin = jnp.cos(emb), jnp.sin(emb)

    q_rot, q_pass = q[..., :rot], q[..., rot:]
    k_rot, k_pass = k[..., :rot], k[..., rot:]
    q_rot = q_rot * cos + _rotate_half(q_rot) * sin
    k_rot = k_rot * cos + _rotate_half(k_rot) * sin
    q = jnp.concatenate([q_rot, q_pass], axis=-1)
    k = jnp.concatenate([k_rot, k_pass], axis=-1)

    att = jnp.einsum("bhtd,bhsd->bhts", q, k) * (1.0 / math.sqrt(hs))
    mask = jnp.tril(jnp.ones((T, T), dtype=jnp.float32))
    att = jnp.where(mask == 0, -jnp.inf, att)
    att = jax.nn.softmax(att, axis=-1)
    att = att * w[None]
    att = jnp.einsum("oi,bits->bots", p["head_mix"], att)
    out = jnp.einsum("bhts,bhsd->bhtd", att, v)
    out = out.transpose(0, 2, 1, 3).reshape(B, T, A)
    return (out @ p["wo"] + p["bo"]) * p["time_gamma"][:T, :]


# ----------------------------------------------------------------------------
if __name__ == "__main__":
    key = jax.random.PRNGKey(0)
    B, T = 2, 8
    n_head, ctx_len, n_attn, n_embd = 4, 8, 32, 32
    head_size = n_attn // n_head            # 8
    assert n_attn % n_head == 0

    keys = jax.random.split(key, 16)

    def uni(k, shape, scale):
        return jax.random.uniform(k, shape, jnp.float32, -scale, scale)

    kq = 1.0 / math.sqrt(n_embd)
    ko = 1.0 / math.sqrt(n_attn)
    params = dict(
        time_w=1.0 + 0.1 * jax.random.normal(keys[0], (n_head, ctx_len), jnp.float32),
        time_alpha=1.0 + 0.1 * jax.random.normal(keys[1], (n_head, 1, ctx_len), jnp.float32),
        time_beta=1.0 + 0.1 * jax.random.normal(keys[2], (n_head, ctx_len, 1), jnp.float32),
        time_gamma=1.0 + 0.1 * jax.random.normal(keys[3], (ctx_len, 1), jnp.float32),
        wq=uni(keys[4], (n_embd, n_attn), kq), bq=uni(keys[5], (n_attn,), kq),
        wk=uni(keys[6], (n_embd, n_attn), kq), bk=uni(keys[7], (n_attn,), kq),
        wv=uni(keys[8], (n_embd, n_attn), kq), bv=uni(keys[9], (n_attn,), kq),
        head_mix=uni(keys[10], (n_head, n_head), 1.0 / math.sqrt(n_head)),
        wo=uni(keys[11], (n_attn, n_embd), ko), bo=uni(keys[12], (n_embd,), ko),
    )
    x = jax.random.normal(keys[13], (B, T, n_embd), jnp.float32)

    out = mha_pro_forward(x, params, n_head=n_head, ctx_len=ctx_len)
    out = jax.block_until_ready(out)

    with jax.default_matmul_precision("float32"):
        ref = mha_pro_reference(x, params, n_head=n_head, ctx_len=ctx_len)
    ref = jax.block_until_ready(ref)

    assert out.shape == (B, T, n_embd) and out.dtype == jnp.float32
    assert jnp.allclose(out, ref, atol=1e-2, rtol=1e-2), \
        float(jnp.max(jnp.abs(out - ref)))

    print("KERNEL_OK")
</pallas_src>

<mosaic_0001>
module attributes {stable_mosaic.version = 11 : i64} {
  func.func @_qkv_rope_kernel(%arg0: i32, %arg1: i32, %arg2: memref<1x8x32xf32, #tpu.memory_space<vmem>>, %arg3: memref<32x96xf32, #tpu.memory_space<vmem>>, %arg4: memref<1x96xf32, #tpu.memory_space<vmem>>, %arg5: memref<8x2xf32, #tpu.memory_space<vmem>>, %arg6: memref<8x2xf32, #tpu.memory_space<vmem>>, %arg7: memref<1x8x32xf32, #tpu.memory_space<vmem>>, %arg8: memref<1x8x32xf32, #tpu.memory_space<vmem>>, %arg9: memref<1x8x32xf32, #tpu.memory_space<vmem>>) attributes {dimension_semantics = [#tpu.dimension_semantics<parallel>, #tpu.dimension_semantics<parallel>], iteration_bounds = array<i64: 2, 1>, scalar_prefetch = 0 : i64, scratch_operands = 0 : i64, tpu.core_type = #tpu.core_type<tc>, window_params = [{transform_indices = @transform_0, window_bounds = array<i64: 1, 8, 32>}, {pipeline_mode = #tpu.pipeline_mode<synchronous>, transform_indices = @transform_1, window_bounds = array<i64: 32, 96>}, {pipeline_mode = #tpu.pipeline_mode<synchronous>, transform_indices = @transform_2, window_bounds = array<i64: 1, 96>}, {transform_indices = @transform_3, window_bounds = array<i64: 8, 2>}, {transform_indices = @transform_4, window_bounds = array<i64: 8, 2>}, {transform_indices = @transform_5, window_bounds = array<i64: 1, 8, 32>}, {transform_indices = @transform_6, window_bounds = array<i64: 1, 8, 32>}, {transform_indices = @transform_7, window_bounds = array<i64: 1, 8, 32>}]} {
    %c0 = arith.constant 0 : index
    %c0_0 = arith.constant 0 : index
    %c0_1 = arith.constant 0 : index
    %0 = vector.load %arg2[%c0, %c0_0, %c0_1] : memref<1x8x32xf32, #tpu.memory_space<vmem>>, vector<1x8x32xf32>
    %1 = vector.shape_cast %0 : vector<1x8x32xf32> to vector<8x32xf32>
    %c0_2 = arith.constant 0 : index
    %c0_3 = arith.constant 0 : index
    %2 = vector.load %arg3[%c0_2, %c0_3] : memref<32x96xf32, #tpu.memory_space<vmem>>, vector<32x96xf32>
    %cst = arith.constant dense<0.000000e+00> : vector<8x96xf32>
    %3 = tpu.matmul %1, %2, %cst {dimension_numbers = #tpu.dot_dimension_numbers<[1], [0], [0], [1], [0, 0, 1, 1], [], []>} : vector<8x32xf32>, vector<32x96xf32>, vector<8x96xf32> -> vector<8x96xf32>
    %c0_4 = arith.constant 0 : index
    %c0_5 = arith.constant 0 : index
    %4 = vector.load %arg4[%c0_4, %c0_5] : memref<1x96xf32, #tpu.memory_space<vmem>>, vector<1x96xf32>
    %5 = vector.broadcast %4 : vector<1x96xf32> to vector<8x96xf32>
    %6 = arith.addf %3, %5 : vector<8x96xf32>
    %7 = vector.extract_strided_slice %6 {offsets = [0, 0], sizes = [8, 32], strides = [1, 1]} : vector<8x96xf32> to vector<8x32xf32>
    %8 = vector.extract_strided_slice %6 {offsets = [0, 32], sizes = [8, 32], strides = [1, 1]} : vector<8x96xf32> to vector<8x32xf32>
    %9 = vector.extract_strided_slice %6 {offsets = [0, 64], sizes = [8, 32], strides = [1, 1]} : vector<8x96xf32> to vector<8x32xf32>
    %c0_6 = arith.constant 0 : index
    %c0_7 = arith.constant 0 : index
    %c0_8 = arith.constant 0 : index
    %10 = vector.load %arg9[%c0_6, %c0_7, %c0_8] : memref<1x8x32xf32, #tpu.memory_space<vmem>>, vector<1x8x32xf32>
    %11 = vector.shape_cast %10 : vector<1x8x32xf32> to vector<8x32xf32>
    %12 = vector.shape_cast %9 : vector<8x32xf32> to vector<1x8x32xf32>
    tpu.vector_store %arg9[%c0_6, %c0_7, %c0_8], %12 {strides = array<i32>} : memref<1x8x32xf32, #tpu.memory_space<vmem>>, vector<1x8x32xf32>,
    %c0_9 = arith.constant 0 : index
    %c0_10 = arith.constant 0 : index
    %13 = vector.load %arg5[%c0_9, %c0_10] : memref<8x2xf32, #tpu.memory_space<vmem>>, vector<8x2xf32>
    %c0_11 = arith.constant 0 : index
    %c0_12 = arith.constant 0 : index
    %14 = vector.load %arg6[%c0_11, %c0_12] : memref<8x2xf32, #tpu.memory_space<vmem>>, vector<8x2xf32>
    %15 = vector.extract_strided_slice %7 {offsets = [0, 0], sizes = [8, 2], strides = [1, 1]} : vector<8x32xf32> to vector<8x2xf32>
    %16 = vector.extract_strided_slice %7 {offsets = [0, 2], sizes = [8, 2], strides = [1, 1]} : vector<8x32xf32> to vector<8x2xf32>
    %17 = arith.mulf %15, %13 : vector<8x2xf32>
    %18 = arith.mulf %16, %14 : vector<8x2xf32>
    %19 = arith.subf %17, %18 : vector<8x2xf32>
    %c0_13 = arith.constant 0 : index
    %c0_14 = arith.constant 0 : index
    %c0_15 = arith.constant 0 : index
    %20 = vector.load %arg7[%c0_13, %c0_14, %c0_15] : memref<1x8x32xf32, #tpu.memory_space<vmem>>, vector<1x8x2xf32>
    %21 = vector.shape_cast %20 : vector<1x8x2xf32> to vector<8x2xf32>
    %22 = vector.shape_cast %19 : vector<8x2xf32> to vector<1x8x2xf32>
    tpu.vector_store %arg7[%c0_13, %c0_14, %c0_15], %22 {strides = array<i32>} : memref<1x8x32xf32, #tpu.memory_space<vmem>>, vector<1x8x2xf32>,
    %23 = arith.mulf %16, %13 : vector<8x2xf32>
    %24 = arith.mulf %15, %14 : vector<8x2xf32>
    %25 = arith.addf %23, %24 : vector<8x2xf32>
    %c0_16 = arith.constant 0 : index
    %c0_17 = arith.constant 0 : index
    %c2 = arith.constant 2 : index
    %26 = vector.load %arg7[%c0_16, %c0_17, %c2] : memref<1x8x32xf32, #tpu.memory_space<vmem>>, vector<1x8x2xf32>
    %27 = vector.shape_cast %26 : vector<1x8x2xf32> to vector<8x2xf32>
    %28 = vector.shape_cast %25 : vector<8x2xf32> to vector<1x8x2xf32>
    tpu.vector_store %arg7[%c0_16, %c0_17, %c2], %28 {strides = array<i32>} : memref<1x8x32xf32, #tpu.memory_space<vmem>>, vector<1x8x2xf32>,
    %29 = vector.extract_strided_slice %7 {offsets = [0, 4], sizes = [8, 4], strides = [1, 1]} : vector<8x32xf32> to vector<8x4xf32>
    %c0_18 = arith.constant 0 : index
    %c0_19 = arith.constant 0 : index
    %c4 = arith.constant 4 : index
    %30 = vector.load %arg7[%c0_18, %c0_19, %c4] : memref<1x8x32xf32, #tpu.memory_space<vmem>>, vector<1x8x4xf32>
    %31 = vector.shape_cast %30 : vector<1x8x4xf32> to vector<8x4xf32>
    %32 = vector.shape_cast %29 : vector<8x4xf32> to vector<1x8x4xf32>
    tpu.vector_store %arg7[%c0_18, %c0_19, %c4], %32 {strides = array<i32>} : memref<1x8x32xf32, #tpu.memory_space<vmem>>, vector<1x8x4xf32>,
    %33 = vector.extract_strided_slice %8 {offsets = [0, 0], sizes = [8, 2], strides = [1, 1]} : vector<8x32xf32> to vector<8x2xf32>
    %34 = vector.extract_strided_slice %8 {offsets = [0, 2], sizes = [8, 2], strides = [1, 1]} : vector<8x32xf32> to vector<8x2xf32>
    %35 = arith.mulf %33, %13 : vector<8x2xf32>
    %36 = arith.mulf %34, %14 : vector<8x2xf32>
    %37 = arith.subf %35, %36 : vector<8x2xf32>
    %c0_20 = arith.constant 0 : index
    %c0_21 = arith.constant 0 : index
    %c0_22 = arith.constant 0 : index
    %38 = vector.load %arg8[%c0_20, %c0_21, %c0_22] : memref<1x8x32xf32, #tpu.memory_space<vmem>>, vector<1x8x2xf32>
    %39 = vector.shape_cast %38 : vector<1x8x2xf32> to vector<8x2xf32>
    %40 = vector.shape_cast %37 : vector<8x2xf32> to vector<1x8x2xf32>
    tpu.vector_store %arg8[%c0_20, %c0_21, %c0_22], %40 {strides = array<i32>} : memref<1x8x32xf32, #tpu.memory_space<vmem>>, vector<1x8x2xf32>,
    %41 = arith.mulf %34, %13 : vector<8x2xf32>
    %42 = arith.mulf %33, %14 : vector<8x2xf32>
    %43 = arith.addf %41, %42 : vector<8x2xf32>
    %c0_23 = arith.constant 0 : index
    %c0_24 = arith.constant 0 : index
    %c2_25 = arith.constant 2 : index
    %44 = vector.load %arg8[%c0_23, %c0_24, %c2_25] : memref<1x8x32xf32, #tpu.memory_space<vmem>>, vector<1x8x2xf32>
    %45 = vector.shape_cast %44 : vector<1x8x2xf32> to vector<8x2xf32>
    %46 = vector.shape_cast %43 : vector<8x2xf32> to vector<1x8x2xf32>
    tpu.vector_store %arg8[%c0_23, %c0_24, %c2_25], %46 {strides = array<i32>} : memref<1x8x32xf32, #tpu.memory_space<vmem>>, vector<1x8x2xf32>,
    %47 = vector.extract_strided_slice %8 {offsets = [0, 4], sizes = [8, 4], strides = [1, 1]} : vector<8x32xf32> to vector<8x4xf32>
    %c0_26 = arith.constant 0 : index
    %c0_27 = arith.constant 0 : index
    %c4_28 = arith.constant 4 : index
    %48 = vector.load %arg8[%c0_26, %c0_27, %c4_28] : memref<1x8x32xf32, #tpu.memory_space<vmem>>, vector<1x8x4xf32>
    %49 = vector.shape_cast %48 : vector<1x8x4xf32> to vector<8x4xf32>
    %50 = vector.shape_cast %47 : vector<8x4xf32> to vector<1x8x4xf32>
    tpu.vector_store %arg8[%c0_26, %c0_27, %c4_28], %50 {strides = array<i32>} : memref<1x8x32xf32, #tpu.memory_space<vmem>>, vector<1x8x4xf32>,
    %51 = vector.extract_strided_slice %7 {offsets = [0, 8], sizes = [8, 2], strides = [1, 1]} : vector<8x32xf32> to vector<8x2xf32>
    %52 = vector.extract_strided_slice %7 {offsets = [0, 10], sizes = [8, 2], strides = [1, 1]} : vector<8x32xf32> to vector<8x2xf32>
    %53 = arith.mulf %51, %13 : vector<8x2xf32>
    %54 = arith.mulf %52, %14 : vector<8x2xf32>
    %55 = arith.subf %53, %54 : vector<8x2xf32>
    %c0_29 = arith.constant 0 : index
    %c0_30 = arith.constant 0 : index
    %c8 = arith.constant 8 : index
    %56 = vector.load %arg7[%c0_29, %c0_30, %c8] : memref<1x8x32xf32, #tpu.memory_space<vmem>>, vector<1x8x2xf32>
    %57 = vector.shape_cast %56 : vector<1x8x2xf32> to vector<8x2xf32>
    %58 = vector.shape_cast %55 : vector<8x2xf32> to vector<1x8x2xf32>
    tpu.vector_store %arg7[%c0_29, %c0_30, %c8], %58 {strides = array<i32>} : memref<1x8x32xf32, #tpu.memory_space<vmem>>, vector<1x8x2xf32>,
    %59 = arith.mulf %52, %13 : vector<8x2xf32>
    %60 = arith.mulf %51, %14 : vector<8x2xf32>
    %61 = arith.addf %59, %60 : vector<8x2xf32>
    %c0_31 = arith.constant 0 : index
    %c0_32 = arith.constant 0 : index
    %c10 = arith.constant 10 : index
    %62 = vector.load %arg7[%c0_31, %c0_32, %c10] : memref<1x8x32xf32, #tpu.memory_space<vmem>>, vector<1x8x2xf32>
    %63 = vector.shape_cast %62 : vector<1x8x2xf32> to vector<8x2xf32>
    %64 = vector.shape_cast %61 : vector<8x2xf32> to vector<1x8x2xf32>
    tpu.vector_store %arg7[%c0_31, %c0_32, %c10], %64 {strides = array<i32>} : memref<1x8x32xf32, #tpu.memory_space<vmem>>, vector<1x8x2xf32>,
    %65 = vector.extract_strided_slice %7 {offsets = [0, 12], sizes = [8, 4], strides = [1, 1]} : vector<8x32xf32> to vector<8x4xf32>
    %c0_33 = arith.constant 0 : index
    %c0_34 = arith.constant 0 : index
    %c12 = arith.constant 12 : index
    %66 = vector.load %arg7[%c0_33, %c0_34, %c12] : memref<1x8x32xf32, #tpu.memory_space<vmem>>, vector<1x8x4xf32>
    %67 = vector.shape_cast %66 : vector<1x8x4xf32> to vector<8x4xf32>
    %68 = vector.shape_cast %65 : vector<8x4xf32> to vector<1x8x4xf32>
    tpu.vector_store %arg7[%c0_33, %c0_34, %c12], %68 {strides = array<i32>} : memref<1x8x32xf32, #tpu.memory_space<vmem>>, vector<1x8x4xf32>,
    %69 = vector.extract_strided_slice %8 {offsets = [0, 8], sizes = [8, 2], strides = [1, 1]} : vector<8x32xf32> to vector<8x2xf32>
    %70 = vector.extract_strided_slice %8 {offsets = [0, 10], sizes = [8, 2], strides = [1, 1]} : vector<8x32xf32> to vector<8x2xf32>
    %71 = arith.mulf %69, %13 : vector<8x2xf32>
    %72 = arith.mulf %70, %14 : vector<8x2xf32>
    %73 = arith.subf %71, %72 : vector<8x2xf32>
    %c0_35 = arith.constant 0 : index
    %c0_36 = arith.constant 0 : index
    %c8_37 = arith.constant 8 : index
    %74 = vector.load %arg8[%c0_35, %c0_36, %c8_37] : memref<1x8x32xf32, #tpu.memory_space<vmem>>, vector<1x8x2xf32>
    %75 = vector.shape_cast %74 : vector<1x8x2xf32> to vector<8x2xf32>
    %76 = vector.shape_cast %73 : vector<8x2xf32> to vector<1x8x2xf32>
    tpu.vector_store %arg8[%c0_35, %c0_36, %c8_37], %76 {strides = array<i32>} : memref<1x8x32xf32, #tpu.memory_space<vmem>>, vector<1x8x2xf32>,
    %77 = arith.mulf %70, %13 : vector<8x2xf32>
    %78 = arith.mulf %69, %14 : vector<8x2xf32>
    %79 = arith.addf %77, %78 : vector<8x2xf32>
    %c0_38 = arith.constant 0 : index
    %c0_39 = arith.constant 0 : index
    %c10_40 = arith.constant 10 : index
    %80 = vector.load %arg8[%c0_38, %c0_39, %c10_40] : memref<1x8x32xf32, #tpu.memory_space<vmem>>, vector<1x8x2xf32>
    %81 = vector.shape_cast %80 : vector<1x8x2xf32> to vector<8x2xf32>
    %82 = vector.shape_cast %79 : vector<8x2xf32> to vector<1x8x2xf32>
    tpu.vector_store %arg8[%c0_38, %c0_39, %c10_40], %82 {strides = array<i32>} : memref<1x8x32xf32, #tpu.memory_space<vmem>>, vector<1x8x2xf32>,
    %83 = vector.extract_strided_slice %8 {offsets = [0, 12], sizes = [8, 4], strides = [1, 1]} : vector<8x32xf32> to vector<8x4xf32>
    %c0_41 = arith.constant 0 : index
    %c0_42 = arith.constant 0 : index
    %c12_43 = arith.constant 12 : index
    %84 = vector.load %arg8[%c0_41, %c0_42, %c12_43] : memref<1x8x32xf32, #tpu.memory_space<vmem>>, vector<1x8x4xf32>
    %85 = vector.shape_cast %84 : vector<1x8x4xf32> to vector<8x4xf32>
    %86 = vector.shape_cast %83 : vector<8x4xf32> to vector<1x8x4xf32>
    tpu.vector_store %arg8[%c0_41, %c0_42, %c12_43], %86 {strides = array<i32>} : memref<1x8x32xf32, #tpu.memory_space<vmem>>, vector<1x8x4xf32>,
    %87 = vector.extract_strided_slice %7 {offsets = [0, 16], sizes = [8, 2], strides = [1, 1]} : vector<8x32xf32> to vector<8x2xf32>
    %88 = vector.extract_strided_slice %7 {offsets = [0, 18], sizes = [8, 2], strides = [1, 1]} : vector<8x32xf32> to vector<8x2xf32>
    %89 = arith.mulf %87, %13 : vector<8x2xf32>
    %90 = arith.mulf %88, %14 : vector<8x2xf32>
    %91 = arith.subf %89, %90 : vector<8x2xf32>
    %c0_44 = arith.constant 0 : index
    %c0_45 = arith.constant 0 : index
    %c16 = arith.constant 16 : index
    %92 = vector.load %arg7[%c0_44, %c0_45, %c16] : memref<1x8x32xf32, #tpu.memory_space<vmem>>, vector<1x8x2xf32>
    %93 = vector.shape_cast %92 : vector<1x8x2xf32> to vector<8x2xf32>
    %94 = vector.shape_cast %91 : vector<8x2xf32> to vector<1x8x2xf32>
    tpu.vector_store %arg7[%c0_44, %c0_45, %c16], %94 {strides = array<i32>} : memref<1x8x32xf32, #tpu.memory_space<vmem>>, vector<1x8x2xf32>,
    %95 = arith.mulf %88, %13 : vector<8x2xf32>
    %96 = arith.mulf %87, %14 : vector<8x2xf32>
    %97 = arith.addf %95, %96 : vector<8x2xf32>
    %c0_46 = arith.constant 0 : index
    %c0_47 = arith.constant 0 : index
    %c18 = arith.constant 18 : index
    %98 = vector.load %arg7[%c0_46, %c0_47, %c18] : memref<1x8x32xf32, #tpu.memory_space<vmem>>, vector<1x8x2xf32>
    %99 = vector.shape_cast %98 : vector<1x8x2xf32> to vector<8x2xf32>
    %100 = vector.shape_cast %97 : vector<8x2xf32> to vector<1x8x2xf32>
    tpu.vector_store %arg7[%c0_46, %c0_47, %c18], %100 {strides = array<i32>} : memref<1x8x32xf32, #tpu.memory_space<vmem>>, vector<1x8x2xf32>,
    %101 = vector.extract_strided_slice %7 {offsets = [0, 20], sizes = [8, 4], strides = [1, 1]} : vector<8x32xf32> to vector<8x4xf32>
    %c0_48 = arith.constant 0 : index
    %c0_49 = arith.constant 0 : index
    %c20 = arith.constant 20 : index
    %102 = vector.load %arg7[%c0_48, %c0_49, %c20] : memref<1x8x32xf32, #tpu.memory_space<vmem>>, vector<1x8x4xf32>
    %103 = vector.shape_cast %102 : vector<1x8x4xf32> to vector<8x4xf32>
    %104 = vector.shape_cast %101 : vector<8x4xf32> to vector<1x8x4xf32>
    tpu.vector_store %arg7[%c0_48, %c0_49, %c20], %104 {strides = array<i32>} : memref<1x8x32xf32, #tpu.memory_space<vmem>>, vector<1x8x4xf32>,
    %105 = vector.extract_strided_slice %8 {offsets = [0, 16], sizes = [8, 2], strides = [1, 1]} : vector<8x32xf32> to vector<8x2xf32>
    %106 = vector.extract_strided_slice %8 {offsets = [0, 18], sizes = [8, 2], strides = [1, 1]} : vector<8x32xf32> to vector<8x2xf32>
    %107 = arith.mulf %105, %13 : vector<8x2xf32>
    %108 = arith.mulf %106, %14 : vector<8x2xf32>
    %109 = arith.subf %107, %108 : vector<8x2xf32>
    %c0_50 = arith.constant 0 : index
    %c0_51 = arith.constant 0 : index
    %c16_52 = arith.constant 16 : index
    %110 = vector.load %arg8[%c0_50, %c0_51, %c16_52] : memref<1x8x32xf32, #tpu.memory_space<vmem>>, vector<1x8x2xf32>
    %111 = vector.shape_cast %110 : vector<1x8x2xf32> to vector<8x2xf32>
    %112 = vector.shape_cast %109 : vector<8x2xf32> to vector<1x8x2xf32>
    tpu.vector_store %arg8[%c0_50, %c0_51, %c16_52], %112 {strides = array<i32>} : memref<1x8x32xf32, #tpu.memory_space<vmem>>, vector<1x8x2xf32>,
    %113 = arith.mulf %106, %13 : vector<8x2xf32>
    %114 = arith.mulf %105, %14 : vector<8x2xf32>
    %115 = arith.addf %113, %114 : vector<8x2xf32>
    %c0_53 = arith.constant 0 : index
    %c0_54 = arith.constant 0 : index
    %c18_55 = arith.constant 18 : index
    %116 = vector.load %arg8[%c0_53, %c0_54, %c18_55] : memref<1x8x32xf32, #tpu.memory_space<vmem>>, vector<1x8x2xf32>
    %117 = vector.shape_cast %116 : vector<1x8x2xf32> to vector<8x2xf32>
    %118 = vector.shape_cast %115 : vector<8x2xf32> to vector<1x8x2xf32>
    tpu.vector_store %arg8[%c0_53, %c0_54, %c18_55], %118 {strides = array<i32>} : memref<1x8x32xf32, #tpu.memory_space<vmem>>, vector<1x8x2xf32>,
    %119 = vector.extract_strided_slice %8 {offsets = [0, 20], sizes = [8, 4], strides = [1, 1]} : vector<8x32xf32> to vector<8x4xf32>
    %c0_56 = arith.constant 0 : index
    %c0_57 = arith.constant 0 : index
    %c20_58 = arith.constant 20 : index
    %120 = vector.load %arg8[%c0_56, %c0_57, %c20_58] : memref<1x8x32xf32, #tpu.memory_space<vmem>>, vector<1x8x4xf32>
    %121 = vector.shape_cast %120 : vector<1x8x4xf32> to vector<8x4xf32>
    %122 = vector.shape_cast %119 : vector<8x4xf32> to vector<1x8x4xf32>
    tpu.vector_store %arg8[%c0_56, %c0_57, %c20_58], %122 {strides = array<i32>} : memref<1x8x32xf32, #tpu.memory_space<vmem>>, vector<1x8x4xf32>,
    %123 = vector.extract_strided_slice %7 {offsets = [0, 24], sizes = [8, 2], strides = [1, 1]} : vector<8x32xf32> to vector<8x2xf32>
    %124 = vector.extract_strided_slice %7 {offsets = [0, 26], sizes = [8, 2], strides = [1, 1]} : vector<8x32xf32> to vector<8x2xf32>
    %125 = arith.mulf %123, %13 : vector<8x2xf32>
    %126 = arith.mulf %124, %14 : vector<8x2xf32>
    %127 = arith.subf %125, %126 : vector<8x2xf32>
    %c0_59 = arith.constant 0 : index
    %c0_60 = arith.constant 0 : index
    %c24 = arith.constant 24 : index
    %128 = vector.load %arg7[%c0_59, %c0_60, %c24] : memref<1x8x32xf32, #tpu.memory_space<vmem>>, vector<1x8x2xf32>
    %129 = vector.shape_cast %128 : vector<1x8x2xf32> to vector<8x2xf32>
    %130 = vector.shape_cast %127 : vector<8x2xf32> to vector<1x8x2xf32>
    tpu.vector_store %arg7[%c0_59, %c0_60, %c24], %130 {strides = array<i32>} : memref<1x8x32xf32, #tpu.memory_space<vmem>>, vector<1x8x2xf32>,
    %131 = arith.mulf %124, %13 : vector<8x2xf32>
    %132 = arith.mulf %123, %14 : vector<8x2xf32>
    %133 = arith.addf %131, %132 : vector<8x2xf32>
    %c0_61 = arith.constant 0 : index
    %c0_62 = arith.constant 0 : index
    %c26 = arith.constant 26 : index
    %134 = vector.load %arg7[%c0_61, %c0_62, %c26] : memref<1x8x32xf32, #tpu.memory_space<vmem>>, vector<1x8x2xf32>
    %135 = vector.shape_cast %134 : vector<1x8x2xf32> to vector<8x2xf32>
    %136 = vector.shape_cast %133 : vector<8x2xf32> to vector<1x8x2xf32>
    tpu.vector_store %arg7[%c0_61, %c0_62, %c26], %136 {strides = array<i32>} : memref<1x8x32xf32, #tpu.memory_space<vmem>>, vector<1x8x2xf32>,
    %137 = vector.extract_strided_slice %7 {offsets = [0, 28], sizes = [8, 4], strides = [1, 1]} : vector<8x32xf32> to vector<8x4xf32>
    %c0_63 = arith.constant 0 : index
    %c0_64 = arith.constant 0 : index
    %c28 = arith.constant 28 : index
    %138 = vector.load %arg7[%c0_63, %c0_64, %c28] : memref<1x8x32xf32, #tpu.memory_space<vmem>>, vector<1x8x4xf32>
    %139 = vector.shape_cast %138 : vector<1x8x4xf32> to vector<8x4xf32>
    %140 = vector.shape_cast %137 : vector<8x4xf32> to vector<1x8x4xf32>
    tpu.vector_store %arg7[%c0_63, %c0_64, %c28], %140 {strides = array<i32>} : memref<1x8x32xf32, #tpu.memory_space<vmem>>, vector<1x8x4xf32>,
    %141 = vector.extract_strided_slice %8 {offsets = [0, 24], sizes = [8, 2], strides = [1, 1]} : vector<8x32xf32> to vector<8x2xf32>
    %142 = vector.extract_strided_slice %8 {offsets = [0, 26], sizes = [8, 2], strides = [1, 1]} : vector<8x32xf32> to vector<8x2xf32>
    %143 = arith.mulf %141, %13 : vector<8x2xf32>
    %144 = arith.mulf %142, %14 : vector<8x2xf32>
    %145 = arith.subf %143, %144 : vector<8x2xf32>
    %c0_65 = arith.constant 0 : index
    %c0_66 = arith.constant 0 : index
    %c24_67 = arith.constant 24 : index
    %146 = vector.load %arg8[%c0_65, %c0_66, %c24_67] : memref<1x8x32xf32, #tpu.memory_space<vmem>>, vector<1x8x2xf32>
    %147 = vector.shape_cast %146 : vector<1x8x2xf32> to vector<8x2xf32>
    %148 = vector.shape_cast %145 : vector<8x2xf32> to vector<1x8x2xf32>
    tpu.vector_store %arg8[%c0_65, %c0_66, %c24_67], %148 {strides = array<i32>} : memref<1x8x32xf32, #tpu.memory_space<vmem>>, vector<1x8x2xf32>,
    %149 = arith.mulf %142, %13 : vector<8x2xf32>
    %150 = arith.mulf %141, %14 : vector<8x2xf32>
    %151 = arith.addf %149, %150 : vector<8x2xf32>
    %c0_68 = arith.constant 0 : index
    %c0_69 = arith.constant 0 : index
    %c26_70 = arith.constant 26 : index
    %152 = vector.load %arg8[%c0_68, %c0_69, %c26_70] : memref<1x8x32xf32, #tpu.memory_space<vmem>>, vector<1x8x2xf32>
    %153 = vector.shape_cast %152 : vector<1x8x2xf32> to vector<8x2xf32>
    %154 = vector.shape_cast %151 : vector<8x2xf32> to vector<1x8x2xf32>
    tpu.vector_store %arg8[%c0_68, %c0_69, %c26_70], %154 {strides = array<i32>} : memref<1x8x32xf32, #tpu.memory_space<vmem>>, vector<1x8x2xf32>,
    %155 = vector.extract_strided_slice %8 {offsets = [0, 28], sizes = [8, 4], strides = [1, 1]} : vector<8x32xf32> to vector<8x4xf32>
    %c0_71 = arith.constant 0 : index
    %c0_72 = arith.constant 0 : index
    %c28_73 = arith.constant 28 : index
    %156 = vector.load %arg8[%c0_71, %c0_72, %c28_73] : memref<1x8x32xf32, #tpu.memory_space<vmem>>, vector<1x8x4xf32>
    %157 = vector.shape_cast %156 : vector<1x8x4xf32> to vector<8x4xf32>
    %158 = vector.shape_cast %155 : vector<8x4xf32> to vector<1x8x4xf32>
    tpu.vector_store %arg8[%c0_71, %c0_72, %c28_73], %158 {strides = array<i32>} : memref<1x8x32xf32, #tpu.memory_space<vmem>>, vector<1x8x4xf32>,
    return
  }
  func.func @transform_0(%arg0: i32, %arg1: i32) -> (i32, i32, i32) {
    %c0_i32 = arith.constant 0 : i32
    %c0_i32_0 = arith.constant 0 : i32
    return %arg0, %arg1, %c0_i32 : i32, i32, i32
  }
  func.func @transform_1(%arg0: i32, %arg1: i32) -> (i32, i32) {
    %c0_i32 = arith.constant 0 : i32
    %c0_i32_0 = arith.constant 0 : i32
    %c0_i32_1 = arith.constant 0 : i32
    return %c0_i32, %c0_i32_0 : i32, i32
  }
  func.func @transform_2(%arg0: i32, %arg1: i32) -> (i32, i32) {
    %c0_i32 = arith.constant 0 : i32
    %c0_i32_0 = arith.constant 0 : i32
    %c0_i32_1 = arith.constant 0 : i32
    return %c0_i32, %c0_i32_0 : i32, i32
  }
  func.func @transform_3(%arg0: i32, %arg1: i32) -> (i32, i32) {
    %c0_i32 = arith.constant 0 : i32
    %c0_i32_0 = arith.constant 0 : i32
    return %arg1, %c0_i32 : i32, i32
  }
  func.func @transform_4(%arg0: i32, %arg1: i32) -> (i32, i32) {
    %c0_i32 = arith.constant 0 : i32
    %c0_i32_0 = arith.constant 0 : i32
    return %arg1, %c0_i32 : i32, i32
  }
  func.func @transform_5(%arg0: i32, %arg1: i32) -> (i32, i32, i32) {
    %c0_i32 = arith.constant 0 : i32
    %c0_i32_0 = arith.constant 0 : i32
    return %arg0, %arg1, %c0_i32 : i32, i32, i32
  }
  func.func @transform_6(%arg0: i32, %arg1: i32) -> (i32, i32, i32) {
    %c0_i32 = arith.constant 0 : i32
    %c0_i32_0 = arith.constant 0 : i32
    return %arg0, %arg1, %c0_i32 : i32, i32, i32
  }
  func.func @transform_7(%arg0: i32, %arg1: i32) -> (i32, i32, i32) {
    %c0_i32 = arith.constant 0 : i32
    %c0_i32_0 = arith.constant 0 : i32
    return %arg0, %arg1, %c0_i32 : i32, i32, i32
  }
}

</mosaic_0001>

<bundles_post_ra>
// kernel: tpu_custom_call.1
= control target key start
LH: loop header
LB: loop body
LE: loop exit
PB: predicated region body
PF: predicated region fallthrough
CT: control target
= control target key end

     0   :  { %s1773_s0 = inlined_call_operand.vmem [shape: f32[2,8,32], index: 0, kind: input, shape index: {}]   ;;  %s1774_s1 = inlined_call_operand.hbm [shape: f32[32,96], index: 1, kind: input, shape index: {}]   ;;  %s1775_s2 = inlined_call_operand.vmem [shape: f32[1,96], index: 2, kind: input, shape index: {}]   ;;  %s1776_s3 = inlined_call_operand.vmem [shape: f32[8,2], index: 3, kind: input, shape index: {}]   ;;  %s1777_s4 = inlined_call_operand.vmem [shape: f32[8,2], index: 4, kind: input, shape index: {}]   ;;  %s1778_s5 = inlined_call_operand.hbm [shape: f32[2,8,32], index: 5, kind: output, shape index: {0}]   ;;  %s1779_s6 = inlined_call_operand.hbm [shape: f32[2,8,32], index: 6, kind: output, shape index: {1}]   ;;  %s1780_s7 = inlined_call_operand.hbm [shape: f32[2,8,32], index: 7, kind: output, shape index: {2}]  }
   0x1   :  { %1786 = sst [smem:[#allocation12_spill]] %s1773_s0 }
   0x2   :  { %13 = vsyncpa [#allocation3], 0 }
   0x3   :  { %14 = vsyncpa [#allocation4], 0 }
   0x4   :  { %16 = vsyncpa [#allocation4 + $0x1], 0 }
   0x5   :  { %17 = vsyncpa [#allocation7], 0 }
   0x6   :  { %19 = vsyncpa [#allocation7 + $0x1], 0  ;;  %s1350_s24 = smov 0   ;;  %s1352_s25 = smov 0  }
   0x7   :  { %s1354_s26 = smov 0   ;;  %s1356_s27 = smov 0  }
   0x8   :  { %s1358_s28 = smov 0   ;;  %s1360_s29 = smov 0  }
   0x9 LB: > { %s1381_s30 = sadd.s32 4294967295, %s1281_s29   ;;  %s1784_s8 = sadd.s32 4294967294, %s1281_s29   ;;  %s1281_s29 = sphi %s1360_s29, %s25_s29   ;;  %s1277_s28 = sphi %s1358_s28, %s1804_s28   ;;  %s1273_s27 = sphi %s1356_s27, %s1803_s27   ;;  %s1269_s26 = sphi %s1354_s26, %s1802_s26   ;;  %s1265_s25 = sphi %s1352_s25, %s1801_s25   ;;  %s1261_s24 = sphi %s1350_s24, %s1800_s24  }
   0xa   : > { %s37_s9 = sadd.s32 1, %s1277_s28  ;;  %s168_s10 = sadd.s32 1, %s1269_s26 }
   0xb   : > { %p39_p0 = scmp.ge.s32.totalorder %s37_s9, 2  ;;  %p178_p1 = scmp.ne.s32.totalorder %s1269_s26, %s1265_s25 }
   0xc   : > { %p179_p2 = scmp.eq.s32.totalorder %s1381_s30, 1  ;;  %p184_p3 = scmp.ne.s32.totalorder %s1265_s25, %s1261_s24 }
   0xd   : > { %s1806_s9 = smov (%p39_p0, %s37_s9), 0  ;;  %p185_p5 = scmp.eq.s32.totalorder %s1784_s8, 1 }
   0xe   : > { %p1393_p4 = por %p179_p2, %p178_p1  ;;  %s163_s12 = ssub.s32 %s1277_s28, %s1806_s9 }
   0xf   : > { %p969_p6 = scmp.ge.s32.totalorder %s1281_s29, 1  ;;  %p166_p7 = scmp.eq.s32.totalorder %s163_s12, 0 }
  0x10   : > { %s1787_s11 = scalar_select %p1393_p4, 1, 0 }
  0x11   : > { %p1402_p8 = por %p185_p5, %p184_p3  ;;  %p248_p9 = scmp.lt.s32.totalorder %s1281_s29, 3 }
  0x12   : > { %s1408_s14 = scalar_select %p166_p7, %s1269_s26, %s168_s10  }
  0x13   : > { %s1788_s13 = scalar_select %p1402_p8, 1, 0 }
  0x14   : > { %p1410_p10 = pnand %p969_p6, %p248_p9  ;;  %p1781_p11 = scmp.eq.s32.totalorder %s1381_s30, 0 }
  0x15   : > { %s1283_s16 = smov [#allocation2]   ;;  %s1111_s21 = scalar_lea.hbm %s1774_s1, 512 }
  0x16   : > { %s1789_s15 = scalar_select %p1410_p10, 1, 0 }
  0x17   : > { %p1022_p12 = pneg %p1410_p10  ;;  %s260_s17 = sshll.u32 %s1283_s16, 4  ;;  %s261_s17 = int_to_ptr.vmem [resolvable:$true] %s260_s17 }
  0x18   : > { %p1112_p0 = scmp.ne.s32.totalorder %s1774_s1, %s1111_s21  ;;  %p1118_p5 = scmp.lt.u32.totalorder %s1111_s21, %s1774_s1 }
  0x19   : > { %p1419_p13 = pnand %p1781_p11, %p1022_p12 }
  0x1b   : > { %p1113_p1 = pneg %p1419_p13 }
  0x1d   : > { %p1114_p2 = pnand %p1113_p1, %p1112_p0 }
  0x1f   : > { %p1115_p3 = pneg %p1114_p2 }
  0x21   : > { %p1120_p6 = pnand %p1118_p5, %p1115_p3 }
  0x23   : > { %1123 = shalt.err (!%p1120_p6)
}
  0x24   : > { %s1124_s16 = scalar_lea.vmem %s261_s17, 512  ;;  %p1132_p11 = scmp.lt.s32.totalorder %s261_s17, %s261_s17 }
  0x25   : > { %p1125_p7 = scmp.ne.s32.totalorder %s261_s17, %s1124_s16  ;;  %p1133_p8 = scmp.lt.s32.totalorder %s1124_s16, %s1124_s16 }
  0x27   : > { %p1127_p9 = pnand %p1125_p7, %p1113_p1  ;;  %p1134_p4 = por %p1133_p8, %p1132_p11 }
  0x29   : > { %p1128_p12 = pneg %p1127_p9 }
  0x2b   : > { %p1135_p10 = pnand %p1134_p4, %p1128_p12 }
  0x2d   : > { %1138 = shalt.err (!%p1135_p10)
}
  0x2e   : > { %s1284_s19 = smov 128   ;;  %s1285_s20 = smov 8  }
  0x2f   : > { %1025 = dma.hbm_to_vmem [thread:$0]  (!%p1419_p13), %s1774_s1, 512, %s261_s17, [#allocation3], %s1284_s19, %s1284_s19, %s1285_s20  }
  0x30   : > { %p1791_p0 = scmp.ne.s32.totalorder %s1789_s15, 0 }
  0x31   : > { %p1792_p2 = scmp.eq.s32.totalorder (!%p1791_p0), %s1381_s30, 0 }
  0x32   : > { %303 = sbr.rel (%p1791_p0) target bundleno = 596 (0x254), region = 40 }
  0x39   : > { %1248 = dma.done.wait (%p1792_p2), [#allocation3], 512   ;;  %p1793_p1 = pmov %p1792_p2 }
  0x3a   : > { %p355_p4 = scmp.lt.s32.totalorder %s1273_s27, 1  ;;  %v1286_v0 = vmov 0.0|0.0   ;;  %vm1287_vm0 = vmmov 0   ;;  %v1288_v1 = vmov 0.0   ;;  %v371_v2 = vld [vmem:[#allocation2] sm:$0xff]  ;;  %v372_v3 = vld [vmem:[#allocation2 + $0x8] sm:$0xff] }
  0x3b   : > { %1250 = vsyncadd (%p1793_p1), [#allocation3], 4294966784  ;;  %1006 = vmatprep.subr.bf16.mxu0 %v1286_v0  ;;  %1003 = vmatprep.mubr.msk.f32.mxu0 %vm1287_vm0, %v1288_v1  ;;  %v373_v4 = vld [vmem:[#allocation2 + $0x10] sm:$0xff]  ;;  %v1007_v5 = vpack.c.bf16 %v372_v3, %v371_v2  ;;  %v374_v6 = vld [vmem:[#allocation2 + $0x18] sm:$0xff]  ;;  %s1289_s10 = smov 34   ;;  %s1290_s12 = smov 42  }
  0x3c   : > { %s356_s18 = scalar_select %p355_p4, %s1273_s27, 1  ;;  %v1450_v7 = vld [vmem:[%s1777_s4] sm:$0xff]  ;;  %v1010_v8 = vpack.c.bf16 %v374_v6, %v373_v4  ;;  %vm382_vm1 = vcmask 261120   ;;  %vm474_vm2 = vcmask 15360   ;;  %vm487_vm3 = vcmask 31760  }
  0x3d   : > { %495 = vrot.lane.b32.xlu0 %v1450_v7, %s1289_s10  ;;  %567 = vrot.lane.b32.xlu1 %v1450_v7, %s1290_s12  ;;  %s1794_s0 = sld [smem:[#allocation12_spill]]  ;;  %s1291_s22 = smov 32   ;;  %v1468_v10 = vld [vmem:[%s1776_s3] sm:$0xff]  ;;  %vm489_vm4 = vcmask 64544   ;;  %vm544_vm5 = vcmask 80960   ;;  %vm559_vm6 = vcmask 97360  }
  0x3e   : > { %s979_s15 = sshll.u32 %s356_s18, 3  ;;  %1008 = vmatpush3.bf16.msra.mxu0 %v1007_v5  ;;  %s1292_s23 = smov 40   ;;  %v980_v15 = vld [vmem:[%s1775_s2] ss:$0 sm:$0xff]  ;;  %vm561_vm7 = vcmask 130144   ;;  %vm613_vm8 = vcmask 146560  }
  0x3f   : > { %1009 = vmatprep.subr.bf16.mxu0 %v1286_v0  ;;  %s1293_s18 = smov 50   ;;  %s1294_s17 = smov 48   ;;  %vm628_vm9 = vcmask 162960   ;;  %vm630_vm10 = vcmask 195744   ;;  %vm682_vm11 = vcmask 212160   ;;  %vm697_vm12 = vcmask 228560  }
  0x40   : > { %s1295_s21 = smov 58   ;;  %s1298_s8 = smov 10   ;;  %vm699_vm13 = vcmask 261344  }
  0x41   : > { %513 = vrot.lane.b32.xlu0 %v1450_v7, %s1291_s22  ;;  %585 = vrot.lane.b32.xlu1 %v1450_v7, %s1292_s23  ;;  %s1299_s16 = smov 8   ;;  %s338_s19 = sand.u32 1, %s1265_s25  }
  0x42   : > { %1011 = vmatpush3.bf16.msra.mxu0 %v1010_v8  ;;  %p1795_p10 = scmp.ne.s32.totalorder %s1787_s11, 0 }
  0x43   : > { %s361_s20 = scalar_lea.vmem %s1794_s0, %s979_s15  ;;  %s1296_s15 = smov 56  }
  0x44   : > { %v370_v9 = vld [vmem:[%s361_s20] sm:$0xff]  ;;  %s1297_s20 = smov 2  }
  0x45   : > { %1004 = vmatmul.mubr.msk.f32.vlgmr.msra.gmra.mrb[0].mxu0 %vm382_vm1, %v370_v9  ;;  %636 = vrot.lane.b32.xlu0 %v1450_v7, %s1293_s18 }
  0x46   : > { %654 = vrot.lane.b32.xlu1 %v1450_v7, %s1294_s17 }
  0x49   : > { %705 = vrot.lane.b32.xlu0 %v1450_v7, %s1295_s21 }
  0x4a   : > { %723 = vrot.lane.b32.xlu1 %v1450_v7, %s1296_s15 }
  0x4d   : > { %491 = vrot.lane.b32.xlu0 %v1468_v10, %s1291_s22  ;;  %s1300_s22 = smov 18  }
  0x4e   : > { %465 = vrot.lane.b32.xlu1 %v1450_v7, %s1297_s20 }
  0x51   : > { %509 = vrot.lane.b32.xlu0 %v1468_v10, %s1289_s10  ;;  %s1301_s10 = smov 16  }
  0x52   : > { %563 = vrot.lane.b32.xlu1 %v1468_v10, %s1292_s23  ;;  %s1302_s23 = smov 26  }
  0x55   : > { %535 = vrot.lane.b32.xlu0 %v1450_v7, %s1298_s8 }
  0x56   : > { %581 = vrot.lane.b32.xlu1 %v1468_v10, %s1290_s12  ;;  %s1303_s12 = smov 24  }
  0x59   : > { %550 = vrot.lane.b32.xlu0 %v1450_v7, %s1299_s16 }
  0x5a   : > { %632 = vrot.lane.b32.xlu1 %v1468_v10, %s1294_s17 }
  0x5d   : > { %604 = vrot.lane.b32.xlu0 %v1450_v7, %s1300_s22 }
  0x5e   : > { %650 = vrot.lane.b32.xlu1 %v1468_v10, %s1293_s18 }
  0x61   : > { %619 = vrot.lane.b32.xlu0 %v1450_v7, %s1301_s10 }
  0x62   : > { %701 = vrot.lane.b32.xlu1 %v1468_v10, %s1296_s15  ;;  %s1305_s15 = smov 96  }
  0x65   : > { %673 = vrot.lane.b32.xlu0 %v1450_v7, %s1302_s23 }
  0x66   : > { %719 = vrot.lane.b32.xlu1 %v1468_v10, %s1295_s21  ;;  %s1304_s21 = smov 126  }
  0x69   : > { %688 = vrot.lane.b32.xlu0 %v1450_v7, %s1303_s12 }
  0xaf   : > { %v496_v11 = vpop.permute.xlu0 %495  ;;  %v568_v14 = vpop.permute.xlu1 %567 }
  0xb3   : > { %v514_v12 = vpop.permute.xlu0 %513  ;;  %v586_v20 = vpop.permute.xlu1 %585 }
  0xb7   : > { %v637_v13 = vpop.permute.xlu0 %636 }
  0xb8   : > { %v655_v26 = vpop.permute.xlu1 %654 }
  0xbb   : > { %v706_v16 = vpop.permute.xlu0 %705 }
  0xbc   : > { %v724_v30 = vpop.permute.xlu1 %723 }
  0xbf   : > { %v492_v23 = vpop.permute.xlu0 %491 }
  0xc0   : > { %v466_v37 = vpop.permute.xlu1 %465 }
  0xc3   : > { %v510_v28 = vpop.permute.xlu0 %509 }
  0xc4   : > { %v564_v46 = vpop.permute.xlu1 %563 }
  0xc7   : > { %v536_v33 = vpop.permute.xlu0 %535 }
  0xc8   : > { %v582_v47 = vpop.permute.xlu1 %581 }
  0xcb   : > { %v551_v34 = vpop.permute.xlu0 %550 }
  0xcc   : > { %v633_v48 = vpop.permute.xlu1 %632 }
  0xcf   : > { %v605_v35 = vpop.permute.xlu0 %604 }
  0xd0   : > { %v651_v49 = vpop.permute.xlu1 %650 }
  0xd3   : > { %v620_v39 = vpop.permute.xlu0 %619 }
  0xd4   : > { %v702_v50 = vpop.permute.xlu1 %701 }
  0xd7   : > { %v674_v43 = vpop.permute.xlu0 %673 }
  0xd8   : > { %v720_v51 = vpop.permute.xlu1 %719 }
  0xdb   : > { %v689_v52 = vpop.permute.xlu0 %688 }
 0x118   : > { %v452_v17 = vpop.f32.mrb[0].mxu0 }
 0x119   : > { %v1496_v18 = vadd.f32 %v980_v15, %v452_v17  ;;  %v1005_v19 = vpop.f32.mrb[1].mxu0 }
 0x11b   : > { %v498_v21 = vmul.f32 %v496_v11, %v1496_v18  ;;  %v516_v22 = vmul.f32 %v514_v12, %v1496_v18  ;;  %v570_v24 = vmul.f32 %v568_v14, %v1496_v18  ;;  %v588_v25 = vmul.f32 %v586_v20, %v1496_v18 }
 0x11c   : > { %v639_v27 = vmul.f32 %v637_v13, %v1496_v18  ;;  %v657_v29 = vmul.f32 %v655_v26, %v1496_v18  ;;  %v708_v31 = vmul.f32 %v706_v16, %v1496_v18  ;;  %v726_v32 = vmul.f32 %v724_v30, %v1496_v18 }
 0x11d   : > { %500 = vrot.lane.b32.xlu1 %v498_v21, %s1304_s21  ;;  %518 = vrot.lane.b32.xlu0 %v516_v22, %s1297_s20  ;;  %v481_v36 = vmul.f32 %v1450_v7, %v1496_v18  ;;  %v538_v38 = vmul.f32 %v536_v33, %v1496_v18  ;;  %v468_v40 = vmul.f32 %v466_v37, %v1496_v18 }
 0x11e   : > { %v607_v41 = vmul.f32 %v605_v35, %v1496_v18  ;;  %v553_v42 = vmul.f32 %v551_v34, %v1496_v18  ;;  %v676_v44 = vmul.f32 %v674_v43, %v1496_v18  ;;  %v622_v45 = vmul.f32 %v620_v39, %v1496_v18 }
 0x11f   : > { %v494_v53 = vmul.f32 %v492_v23, %v1496_v18  ;;  %v512_v57 = vmul.f32 %v510_v28, %v1496_v18  ;;  %v566_v58 = vmul.f32 %v564_v46, %v1496_v18  ;;  %v584_v63 = vmul.f32 %v582_v47, %v1496_v18 }
 0x120   : > { %v635_v3 = vmul.f32 %v633_v48, %v1496_v18  ;;  %v691_v5 = vmul.f32 %v689_v52, %v1496_v18  ;;  %v653_v8 = vmul.f32 %v651_v49, %v1496_v18  ;;  %v722_v9 = vmul.f32 %v720_v51, %v1496_v18 }
 0x121   : > { %572 = vrot.lane.b32.xlu1 %v570_v24, %s1304_s21  ;;  %590 = vrot.lane.b32.xlu0 %v588_v25, %s1297_s20  ;;  %v704_v15 = vmul.f32 %v702_v50, %v1496_v18  ;;  %v463_v25 = vmul.f32 %v1468_v10, %v1496_v18 }
 0x125   : > { %641 = vrot.lane.b32.xlu1 %v639_v27, %s1304_s21  ;;  %659 = vrot.lane.b32.xlu0 %v657_v29, %s1297_s20 }
 0x129   : > { %710 = vrot.lane.b32.xlu1 %v708_v31, %s1304_s21  ;;  %728 = vrot.lane.b32.xlu0 %v726_v32, %s1297_s20 }
 0x12d   : > { %477 = vrot.lane.b32.xlu1 %v1468_v10, %s1297_s20  ;;  %527 = vrot.lane.b32.xlu0 %v1496_v18, %s1305_s15 }
 0x131   : > { %531 = vrot.lane.b32.xlu1 %v1468_v10, %s1299_s16  ;;  %600 = vrot.lane.b32.xlu0 %v1468_v10, %s1301_s10  ;;  %s1624_s10 = sshll.u32 %s1273_s27, 7 }
 0x132   : > { %s1633_s17 = scalar_lea.hbm %s1778_s5, %s1624_s10 }
 0x135   : > { %546 = vrot.lane.b32.xlu1 %v1468_v10, %s1298_s8  ;;  %615 = vrot.lane.b32.xlu0 %v1468_v10, %s1300_s22  ;;  %s1306_s8 = smov 64  }
 0x139   : > { %483 = vrot.lane.b32.xlu1 %v481_v36, %s1297_s20  ;;  %669 = vrot.lane.b32.xlu0 %v1468_v10, %s1303_s12 }
 0x13d   : > { %540 = vrot.lane.b32.xlu1 %v538_v38, %s1304_s21  ;;  %470 = vrot.lane.b32.xlu0 %v468_v40, %s1304_s21 }
 0x141   : > { %609 = vrot.lane.b32.xlu1 %v607_v41, %s1304_s21  ;;  %555 = vrot.lane.b32.xlu0 %v553_v42, %s1297_s20 }
 0x145   : > { %678 = vrot.lane.b32.xlu1 %v676_v44, %s1304_s21  ;;  %624 = vrot.lane.b32.xlu0 %v622_v45, %s1297_s20  ;;  %s739_s21 = scalar_lea.sflag [#allocation4], %s338_s19 }
 0x18f   : > { %v501_v54 = vpop.permute.xlu1 %500  ;;  %v519_v55 = vpop.permute.xlu0 %518 }
 0x190   : > { %v503_v56 = vsub.f32 %v494_v53, %v501_v54  ;;  %v521_v60 = vadd.f32 %v519_v55, %v512_v57 }
 0x192   : > { %505 = vrot.lane.b32.xlu0 %v503_v56, %s1305_s15 }
 0x193   : > { %v573_v59 = vpop.permute.xlu1 %572  ;;  %v591_v61 = vpop.permute.xlu0 %590 }
 0x194   : > { %v575_v62 = vsub.f32 %v566_v58, %v573_v59  ;;  %v593_v1 = vadd.f32 %v591_v61, %v584_v63 }
 0x196   : > { %577 = vrot.lane.b32.xlu1 %v575_v62, %s1305_s15  ;;  %523 = vrot.lane.b32.xlu0 %v521_v60, %s1305_s15 }
 0x197   : > { %v642_v0 = vpop.permute.xlu1 %641  ;;  %v660_v2 = vpop.permute.xlu0 %659 }
 0x198   : > { %v644_v6 = vsub.f32 %v635_v3, %v642_v0  ;;  %v662_v12 = vadd.f32 %v660_v2, %v653_v8 }
 0x19a   : > { %595 = vrot.lane.b32.xlu1 %v593_v1, %s1305_s15  ;;  %684 = vrot.lane.b32.xlu0 %v1468_v10, %s1302_s23 }
 0x19b   : > { %v711_v4 = vpop.permute.xlu1 %710  ;;  %v729_v7 = vpop.permute.xlu0 %728 }
 0x19c   : > { %v731_v13 = vadd.f32 %v729_v7, %v722_v9  ;;  %v713_v17 = vsub.f32 %v704_v15, %v711_v4 }
 0x19e   : > { %646 = vrot.lane.b32.xlu1 %v644_v6, %s1305_s15  ;;  %693 = vrot.lane.b32.xlu0 %v691_v5, %s1297_s20  ;;  %s1569_s20 = sshll.u32 %s338_s19, 3 }
 0x19f   : > { %v478_v11 = vpop.permute.xlu1 %477  ;;  %v1559_v14 = vpop.permute.xlu0 %527  ;;  %s1577_s16 = scalar_lea.vmem [#allocation5], %s1569_s20  ;;  %s1606_s22 = scalar_lea.vmem [#allocation6], %s1569_s20 }
 0x1a0   : > { %v480_v26 = vmul.f32 %v478_v11, %v1496_v18  ;;  %s763_s23 = sshll.u32 %s1577_s16, 4  ;;  %s1635_s23 = int_to_ptr.vmem [resolvable:$true] %s763_s23 }
 0x1a2   : > { %664 = vrot.lane.b32.xlu1 %v662_v12, %s1305_s15  ;;  %733 = vrot.lane.b32.xlu0 %v731_v13, %s1305_s15 }
 0x1a3   : > { %v532_v16 = vpop.permute.xlu1 %531  ;;  %v601_v19 = vpop.permute.xlu0 %600 }
 0x1a4   : > { %v534_v29 = vmul.f32 %v532_v16, %v1496_v18  ;;  %v603_v34 = vmul.f32 %v601_v19, %v1496_v18 }
 0x1a6   : > { %715 = vrot.lane.b32.xlu1 %v713_v17, %s1305_s15  ;;  %s1139_s15 = scalar_lea.vmem %s1635_s23, 128 }
 0x1a7   : > { %v547_v20 = vpop.permute.xlu1 %546  ;;  %v616_v21 = vpop.permute.xlu0 %615  ;;  %p1140_p8 = scmp.ne.s32.totalorder %s1635_s23, %s1139_s15 }
 0x1a8   : > { %v549_v31 = vmul.f32 %v547_v20, %v1496_v18  ;;  %v618_v36 = vmul.f32 %v616_v21, %v1496_v18 }
 0x1a9   : > { %p1141_p11 = pnand %p1140_p8, %p1795_p10 }
 0x1aa   : > { %457 = vrot.lane.b32.xlu1 %v1496_v18, %s1306_s8  ;;  %s1307_s8 = smov [#allocation5]  }
 0x1ab   : > { %v484_v22 = vpop.permute.xlu1 %483  ;;  %v670_v23 = vpop.permute.xlu0 %669  ;;  %p1142_p13 = pneg %p1141_p11  ;;  %s1143_s12 = sshll.u32 %s1307_s8, 4  ;;  %s1144_s12 = int_to_ptr.vmem [resolvable:$false] %s1143_s12 }
 0x1ac   : > { %v486_v30 = vadd.f32 %v484_v22, %v480_v26  ;;  %v672_v40 = vmul.f32 %v670_v23, %v1496_v18  ;;  %s1145_s18 = scalar_lea.vmem %s1144_s12, 256  ;;  %p1146_p3 = scmp.lt.s32.totalorder %s1635_s23, %s1144_s12 }
 0x1ad   : > { %p1147_p5 = scmp.lt.s32.totalorder %s1145_s18, %s1139_s15 }
 0x1af   : > { %v541_v24 = vpop.permute.xlu1 %540  ;;  %v471_v27 = vpop.permute.xlu0 %470  ;;  %p1148_p6 = por %p1147_p5, %p1146_p3 }
 0x1b0   : > { %v473_v28 = vsub.f32 %v463_v25, %v471_v27  ;;  %v543_v10 = vsub.f32 %v534_v29, %v541_v24 }
 0x1b1   : > { %p1149_p7 = pnand %p1148_p6, %p1142_p13 }
 0x1b2   : > { %475 = vst.msk [vmem:[%s1577_s16] sm:$0xff] %vm474_vm2, %v473_v28 }
 0x1b3   : > { %v610_v32 = vpop.permute.xlu1 %609  ;;  %v556_v33 = vpop.permute.xlu0 %555  ;;  %488 = vst.msk [vmem:[%s1577_s16] sm:$0xff] %vm487_vm3, %v486_v30 }
 0x1b4   : > { %v558_v35 = vadd.f32 %v556_v33, %v549_v31  ;;  %490 = vst.msk [vmem:[%s1577_s16] sm:$0xff] %vm489_vm4, %v1496_v18  ;;  %v612_v37 = vsub.f32 %v603_v34, %v610_v32 }
 0x1b5   : > { %545 = vst.msk [vmem:[%s1577_s16] sm:$0xff] %vm544_vm5, %v543_v10 }
 0x1b6   : > { %560 = vst.msk [vmem:[%s1577_s16] sm:$0xff] %vm559_vm6, %v558_v35 }
 0x1b7   : > { %v679_v38 = vpop.permute.xlu1 %678  ;;  %v625_v39 = vpop.permute.xlu0 %624  ;;  %562 = vst.msk [vmem:[%s1577_s16] sm:$0xff] %vm561_vm7, %v1496_v18 }
 0x1b8   : > { %v627_v41 = vadd.f32 %v625_v39, %v618_v36  ;;  %614 = vst.msk [vmem:[%s1577_s16] sm:$0xff] %vm613_vm8, %v612_v37  ;;  %v681_v42 = vsub.f32 %v672_v40, %v679_v38 }
 0x1ba   : > { %629 = vst.msk [vmem:[%s1577_s16] sm:$0xff] %vm628_vm9, %v627_v41 }
 0x1bb   : > { %631 = vst.msk [vmem:[%s1577_s16] sm:$0xff] %vm630_vm10, %v1496_v18 }
 0x1bc   : > { %683 = vst.msk [vmem:[%s1577_s16] sm:$0xff] %vm682_vm11, %v681_v42 }
 0x204   : > { %v506_v43 = vpop.permute.xlu0 %505 }
 0x205   : > { %508 = vst.msk [vmem:[%s1606_s22] sm:$0xff] %vm474_vm2, %v506_v43 }
 0x208   : > { %v578_v44 = vpop.permute.xlu1 %577  ;;  %v524_v45 = vpop.permute.xlu0 %523 }
 0x209   : > { %526 = vst.msk [vmem:[%s1606_s22] sm:$0xff] %vm487_vm3, %v524_v45 }
 0x20a   : > { %530 = vst.msk [vmem:[%s1606_s22] sm:$0xff] %vm489_vm4, %v1559_v14 }
 0x20b   : > { %580 = vst.msk [vmem:[%s1606_s22] sm:$0xff] %vm544_vm5, %v578_v44 }
 0x20c   : > { %v596_v46 = vpop.permute.xlu1 %595  ;;  %v685_v47 = vpop.permute.xlu0 %684 }
 0x20d   : > { %598 = vst.msk [vmem:[%s1606_s22] sm:$0xff] %vm559_vm6, %v596_v46  ;;  %v687_v48 = vmul.f32 %v685_v47, %v1496_v18 }
 0x20e   : > { %599 = vst.msk [vmem:[%s1606_s22] sm:$0xff] %vm561_vm7, %v1559_v14 }
 0x210   : > { %v647_v49 = vpop.permute.xlu1 %646  ;;  %v694_v50 = vpop.permute.xlu0 %693 }
 0x211   : > { %649 = vst.msk [vmem:[%s1606_s22] sm:$0xff] %vm613_vm8, %v647_v49  ;;  %v696_v51 = vadd.f32 %v694_v50, %v687_v48 }
 0x213   : > { %698 = vst.msk [vmem:[%s1577_s16] sm:$0xff] %vm697_vm12, %v696_v51 }
 0x214   : > { %v665_v52 = vpop.permute.xlu1 %664  ;;  %700 = vst.msk [vmem:[%s1577_s16] sm:$0xff] %vm699_vm13, %v1496_v18 }
 0x215   : > { %667 = vst.msk [vmem:[%s1606_s22] sm:$0xff] %vm628_vm9, %v665_v52 }
 0x216   : > { %1152 = shalt.err (!%p1149_p7)
}
 0x217   : > { %s1153_s19 = scalar_lea.hbm %s1633_s17, 128  ;;  %s1157_s8 = scalar_lea.hbm %s1778_s5, 256 }
 0x218   : > { %p1154_p9 = scmp.ne.s32.totalorder %s1633_s17, %s1153_s19  ;;  %p1158_p2 = scmp.lt.u32.totalorder %s1633_s17, %s1778_s5 }
 0x219   : > { %p1159_p1 = scmp.lt.u32.totalorder %s1157_s8, %s1153_s19  ;;  %p1161_p8 = scmp.lt.u32.totalorder %s1153_s19, %s1633_s17 }
 0x21a   : > { %p1155_p12 = pnand %p1154_p9, %p1795_p10 }
 0x21b   : > { %p1160_p4 = por %p1159_p1, %p1158_p2 }
 0x21c   : > { %p1156_p0 = pneg %p1155_p12 }
 0x21d   : > { %p1162_p11 = por %p1161_p8, %p1160_p4 }
 0x21f   : > { %p1163_p13 = pnand %p1162_p11, %p1156_p0 }
 0x221   : > { %1166 = shalt.err (!%p1163_p13)
}
 0x222   : > { %1016 = dma.vmem_to_hbm [thread:$0]  (%p1795_p10), %s1635_s23, 128, %s1633_s17, %s739_s21   ;;  %668 = vst.msk [vmem:[%s1606_s22] sm:$0xff] %vm630_vm10, %v1559_v14  ;;  %v716_v18 = vpop.permute.xlu1 %715  ;;  %v734_v53 = vpop.permute.xlu0 %733 }
 0x223   : > { %s777_s0 = sshll.u32 %s1606_s22, 4  ;;  %s1785_s27 = scalar_lea.vmem [#allocation8], %s1569_s20  ;;  %718 = vst.msk [vmem:[%s1606_s22] sm:$0xff] %vm682_vm11, %v716_v18  ;;  %s1683_s0 = int_to_ptr.vmem [resolvable:$true] %s777_s0 }
 0x224   : > { %s791_s15 = sshll.u32 %s1785_s27, 4  ;;  %s1681_s16 = scalar_lea.hbm %s1779_s6, %s1624_s10  ;;  %736 = vst.msk [vmem:[%s1606_s22] sm:$0xff] %vm697_vm12, %v734_v53  ;;  %s1696_s15 = int_to_ptr.vmem [resolvable:$true] %s791_s15 }
 0x225   : > { %737 = vst.msk [vmem:[%s1606_s22] sm:$0xff] %vm699_vm13, %v1559_v14  ;;  %s1694_s21 = scalar_lea.hbm %s1780_s7, %s1624_s10  ;;  %s1796_s8 = sand.u32 1, %s1381_s30  }
 0x226   : > { %v458_v54 = vpop.permute.xlu1 %457  ;;  %s1700_s12 = scalar_lea.sflag [#allocation7], %s1796_s8  ;;  %s1167_s18 = scalar_lea.vmem %s1683_s0, 128 }
 0x227   : > { %p1168_p3 = scmp.ne.s32.totalorder %s1683_s0, %s1167_s18  ;;  %s1308_s19 = smov [#allocation6]  }
 0x228   : > { %s1171_s27 = sshll.u32 %s1308_s19, 4  ;;  %s1172_s27 = int_to_ptr.vmem [resolvable:$false] %s1171_s27 }
 0x229   : > { %p1169_p5 = pnand %p1168_p3, %p1795_p10  ;;  %s1173_s22 = scalar_lea.vmem %s1172_s27, 256 }
 0x22a   : > { %p1174_p7 = scmp.lt.s32.totalorder %s1683_s0, %s1172_s27  ;;  %p1175_p9 = scmp.lt.s32.totalorder %s1173_s22, %s1167_s18 }
 0x22b   : > { %p1170_p6 = pneg %p1169_p5 }
 0x22c   : > { %p1176_p12 = por %p1175_p9, %p1174_p7 }
 0x22e   : > { %p1177_p0 = pnand %p1176_p12, %p1170_p6 }
 0x230   : > { %1180 = shalt.err (!%p1177_p0)
}
 0x231   : > { %s1181_s30 = scalar_lea.hbm %s1681_s16, 128  ;;  %s1185_s17 = scalar_lea.hbm %s1779_s6, 256 }
 0x232   : > { %p1182_p2 = scmp.ne.s32.totalorder %s1681_s16, %s1181_s30  ;;  %p1186_p8 = scmp.lt.u32.totalorder %s1681_s16, %s1779_s6 }
 0x233   : > { %p1187_p11 = scmp.lt.u32.totalorder %s1185_s17, %s1181_s30  ;;  %p1189_p3 = scmp.lt.u32.totalorder %s1181_s30, %s1681_s16 }
 0x234   : > { %p1183_p1 = pnand %p1182_p2, %p1795_p10 }
 0x235   : > { %p1188_p13 = por %p1187_p11, %p1186_p8 }
 0x236   : > { %p1184_p4 = pneg %p1183_p1 }
 0x237   : > { %p1190_p5 = por %p1189_p3, %p1188_p13 }
 0x239   : > { %p1191_p6 = pnand %p1190_p5, %p1184_p4 }
 0x23b   : > { %1194 = shalt.err (!%p1191_p6)
}
 0x23c   : > { %1017 = dma.vmem_to_hbm [thread:$0]  (%p1795_p10), %s1683_s0, 128, %s1681_s16, %s1700_s12  }
 0x23d   : > { %s1797_s18 = scalar_lea.vmem [#allocation8], %s1569_s20  ;;  %s1195_s19 = scalar_lea.vmem %s1696_s15, 128 }
 0x23e   : > { %460 = vst.msk [vmem:[%s1797_s18] sm:$0xff] %vm382_vm1, %v458_v54  ;;  %p1196_p7 = scmp.ne.s32.totalorder %s1696_s15, %s1195_s19  ;;  %s1309_s22 = smov [#allocation8]  }
 0x23f   : > { %s1199_s30 = sshll.u32 %s1309_s22, 4  ;;  %s1200_s30 = int_to_ptr.vmem [resolvable:$false] %s1199_s30 }
 0x240   : > { %p1197_p9 = pnand %p1196_p7, %p1795_p10  ;;  %s1201_s10 = scalar_lea.vmem %s1200_s30, 256 }
 0x241   : > { %p1202_p0 = scmp.lt.s32.totalorder %s1696_s15, %s1200_s30  ;;  %p1203_p2 = scmp.lt.s32.totalorder %s1201_s10, %s1195_s19 }
 0x242   : > { %p1198_p12 = pneg %p1197_p9 }
 0x243   : > { %p1204_p1 = por %p1203_p2, %p1202_p0 }
 0x245   : > { %p1205_p4 = pnand %p1204_p1, %p1198_p12 }
 0x247   : > { %1208 = shalt.err (!%p1205_p4)
}
 0x248   : > { %s1209_s20 = scalar_lea.hbm %s1694_s21, 128  ;;  %s1213_s23 = scalar_lea.hbm %s1780_s7, 256 }
 0x249   : > { %p1210_p8 = scmp.ne.s32.totalorder %s1694_s21, %s1209_s20  ;;  %p1214_p3 = scmp.lt.u32.totalorder %s1694_s21, %s1780_s7 }
 0x24a   : > { %p1215_p5 = scmp.lt.u32.totalorder %s1213_s23, %s1209_s20  ;;  %p1217_p7 = scmp.lt.u32.totalorder %s1209_s20, %s1694_s21 }
 0x24b   : > { %p1211_p11 = pnand %p1210_p8, %p1795_p10 }
 0x24c   : > { %p1216_p6 = por %p1215_p5, %p1214_p3 }
 0x24d   : > { %p1212_p13 = pneg %p1211_p11 }
 0x24e   : > { %p1218_p9 = por %p1217_p7, %p1216_p6 }
 0x250   : > { %p1219_p12 = pnand %p1218_p9, %p1212_p13 }
 0x252   : > { %1222 = shalt.err (!%p1219_p12)
}
 0x253   : > { %1018 = dma.vmem_to_hbm [thread:$0]  (%p1795_p10), %s1696_s15, 128, %s1694_s21, %s1700_s12  }
 0x254 PF: > { %p1038_p0 = scmp.ge.s32.totalorder %s1281_s29, 2  ;;  %s803_s27 = sand.u32 1, %s1261_s24  }
 0x255   : > { %p1798_p2 = scmp.ne.s32.totalorder %s1788_s13, 0  ;;  %s804_s18 = scalar_lea.sflag [#allocation4], %s803_s27 }
 0x257   : > { %p1027_p1 = pnand %p1038_p0, %p1798_p2 }
 0x259   : > { %1252 = dma.done.wait (!%p1027_p1), %s804_s18, 128  }
 0x25a   : > { %1254 = vsyncadd (!%p1027_p1), %s804_s18, 4294967168  ;;  %s1799_s19 = sadd.s32 4294967294, %s1281_s29  }
 0x25b   : > { %s812_s22 = sand.u32 1, %s1799_s19  }
 0x25c   : > { %s813_s30 = scalar_lea.sflag [#allocation7], %s812_s22 }
 0x25d   : > { %1256 = dma.done.wait (!%p1027_p1), %s813_s30, 256  }
 0x25e   : > { %1258 = vsyncadd (!%p1027_p1), %s813_s30, 4294967040  ;;  %s25_s29 = sadd.s32 1, %s1281_s29   ;;  %s1800_s24 = smov %s1265_s25 }
 0x25f   : > { %p22_p10 = scmp.ge.s32.totalorder %s25_s29, 4   ;;  %s1801_s25 = smov %s1269_s26 }
 0x260   : > { %s1802_s26 = smov %s1408_s14  ;;  %s1803_s27 = smov %s1277_s28 }
 0x261   : > { %s1804_s28 = smov %s1806_s9  ;;  %24 = sbr.rel (!%p22_p10) target bundleno = 9 (0x9), region = 118 }
 0x268   :  { %827 = vsyncpa [#allocation3], 1 }
 0x269   :  { %829 = vsyncpa [#allocation3 + $0x1], 1 }
 0x26a   :  { %830 = vsyncpa [#allocation4], 1 }
 0x26b   :  { %832 = vsyncpa [#allocation4 + $0x1], 1 }
 0x26c   :  { %833 = vsyncpa [#allocation7], 1 }
 0x26d   :  { %835 = vsyncpa [#allocation7 + $0x1], 1 }

</bundles_post_ra>
